<compile_context>
chip_gen: v6e
topology: v6e:2x2x1
jax: 0.10.0
libtpu: 0.0.40
codegen_flags: <defaults>
</compile_context>

<pallas_src>
import jax
import jax.numpy as jnp
from jax import lax
from jax.experimental import pallas as pl
from jax.experimental.pallas import tpu as pltpu


def _round_up(x, m):
    return (x + m - 1) // m * m


# ---------------------------------------------------------------------------
# Path 1: small vocab -> VMEM-resident table + one-hot MXU matmul.
# ---------------------------------------------------------------------------
def _onehot_kernel(idx_ref, table_ref, out_ref):
    """idx_ref (tok_block,1) i32 | table_ref (V,E) resident | out (tok_block,E)."""
    tok_block = out_ref.shape[0]
    vocab = table_ref.shape[0]
    ids = idx_ref[...]                                             # (tok_block, 1)
    iota = lax.broadcasted_iota(jnp.int32, (tok_block, vocab), 1)  # lanes = V
    onehot = (iota == ids).astype(table_ref.dtype)                 # OOB id -> zero row
    # f32 tables: HIGHEST keeps the gather exact (default f32 dot is bf16 passes).
    prec = lax.Precision.HIGHEST if table_ref.dtype == jnp.float32 else None
    out = jnp.dot(onehot, table_ref[...],
                  preferred_element_type=jnp.float32, precision=prec)
    out_ref[...] = out.astype(out_ref.dtype)


# ---------------------------------------------------------------------------
# Path 2: large vocab -> HBM table + windowed per-row DMA gather.
# ---------------------------------------------------------------------------
def _gather_kernel(idx_sref, table_hbm, out_ref, stage_ref, sem):
    """idx_sref: SMEM (padded,) ids | table_hbm: ANY (V,E) | out (tok_block,E)."""
    tok_block = out_ref.shape[0]
    base = pl.program_id(0) * tok_block
    window = min(8, tok_block)          # rows of the table in flight at once

    def issue(t):
        row = idx_sref[base + t]
        pltpu.make_async_copy(table_hbm.at[row], stage_ref.at[t], sem).start()

    def drain(t):
        # Wait descriptor only needs the matching dst/size for sem accounting.
        pltpu.make_async_copy(table_hbm.at[0], stage_ref.at[t], sem).wait()

    @pl.loop(0, window)
    def _(t):
        issue(t)

    @pl.loop(0, tok_block)
    def _(t):
        drain(t)

        @pl.when(t + window < tok_block)
        def _():
            issue(t + window)

    out_ref[...] = stage_ref[...]


# ---------------------------------------------------------------------------
# Wrapper
# ---------------------------------------------------------------------------
def _vmem_capacity_bytes():
    try:
        cap = getattr(pltpu.get_tpu_info(), "vmem_capacity_bytes", None)
        if cap:
            return int(cap)
    except Exception:
        pass
    return 64 << 20          # conservative default = v7x per-core VMEM


def _is_v5():
    try:
        return "v5" in jax.devices()[0].device_kind.lower()
    except Exception:
        return False


def embedding_forward(idx, table, *, force_gather=False):
    """idx: (B, S) integer ids, table: (V, E) -> (B, S, E) (pure row gather)."""
    B, S = idx.shape
    V, E = table.shape
    num_tokens = B * S
    itemsize = jnp.dtype(table.dtype).itemsize

    # Lane-dense embedding dim -> full, unmasked output stores.
    E_pad = _round_up(E, 128)
    if E_pad != E:
        table = jnp.pad(table, ((0, 0), (0, E_pad - E)))

    vmem_cap = _vmem_capacity_bytes()
    hard_cap = int(0.75 * vmem_cap)           # 48 MiB v7x, 96 MiB v5e/v6e
    headroom = 4 << 20

    # One-hot vs DMA-gather crossover (FLOP crossover, chip + dtype aware).
    onehot_v_limit = 1024 if _is_v5() else 4096
    if table.dtype == jnp.float32:
        onehot_v_limit //= 2

    # Constant-index table spec: fetched once; single-buffer it when the
    # installed Pallas exposes pipeline_mode (one-time capability check).
    table_kwargs = {}
    table_buffers = 2
    if hasattr(pl, "Buffered") and hasattr(pl.BlockSpec, "pipeline_mode"):
        table_kwargs["pipeline_mode"] = pl.Buffered(1)
        table_buffers = 1
    table_bytes = table_buffers * V * E_pad * itemsize

    def pick_tok_block(per_token_bytes, budget):
        tb = 512
        while tb > 128 and tb * per_token_bytes > budget:
            tb //= 2
        tb = min(tb, _round_up(num_tokens, 8))
        return max(8, _round_up(tb, 8))

    onehot_per_token = (2 * E_pad * itemsize          # double-buffered out tile
                        + 2 * 128 * 4                 # lane-padded (tok,1) idx bufs
                        + V * (4 + itemsize)          # iota + one-hot temporaries
                        + E_pad * 4)                  # f32 accumulator
    tok_block = pick_tok_block(onehot_per_token,
                               max(hard_cap - table_bytes - headroom, 2 << 20))
    est_onehot = table_bytes + tok_block * onehot_per_token + headroom

    use_onehot = (not force_gather) and (V <= onehot_v_limit) and (est_onehot <= hard_cap)

    if not use_onehot:
        gather_per_token = 3 * E_pad * itemsize       # 2x out bufs + staging row
        tok_block = pick_tok_block(gather_per_token,
                                   max(hard_cap - headroom, 2 << 20))

    padded = _round_up(num_tokens, tok_block)
    grid = padded // tok_block
    # Keep both v7x TensorCores busy when there is enough work.
    if grid < 2 and num_tokens > 256 and tok_block > 128:
        tok_block = max(128, _round_up(tok_block // 2, 8))
        padded = _round_up(num_tokens, tok_block)
        grid = padded // tok_block

    flat = jnp.zeros((padded,), jnp.int32).at[:num_tokens].set(
        idx.reshape(-1).astype(jnp.int32))

    out_shape = jax.ShapeDtypeStruct((padded, E_pad), table.dtype)

    if use_onehot:
        vmem_limit = int(min(max(table_bytes + tok_block * onehot_per_token + headroom,
                                 32 << 20), hard_cap))
        out = pl.pallas_call(
            _onehot_kernel,
            out_shape=out_shape,
            grid=(grid,),
            in_specs=[pl.BlockSpec((tok_block, 1), lambda i: (i, 0)),
                      pl.BlockSpec((V, E_pad), lambda i: (0, 0), **table_kwargs)],
            out_specs=pl.BlockSpec((tok_block, E_pad), lambda i: (i, 0)),
            compiler_params=pltpu.CompilerParams(
                dimension_semantics=("parallel",),
                vmem_limit_bytes=vmem_limit),
        )(flat.reshape(padded, 1), table)
    else:
        vmem_limit = int(min(max(3 * tok_block * E_pad * itemsize + headroom,
                                 32 << 20), hard_cap))
        out = pl.pallas_call(
            _gather_kernel,
            out_shape=out_shape,
            grid_spec=pltpu.PrefetchScalarGridSpec(
                num_scalar_prefetch=1,
                grid=(grid,),
                in_specs=[pl.BlockSpec(memory_space=pl.ANY)],
                out_specs=pl.BlockSpec((tok_block, E_pad), lambda i, ids: (i, 0)),
                scratch_shapes=[pltpu.VMEM((tok_block, E_pad), table.dtype),
                                pltpu.SemaphoreType.DMA(())]),
            compiler_params=pltpu.CompilerParams(
                dimension_semantics=("parallel",),
                vmem_limit_bytes=vmem_limit),
        )(flat, table)

    return out[:num_tokens, :E].reshape(B, S, E)


def make_embedding_table(key, input_size, embedded_size, padding_idx,
                         dtype=jnp.float32):
    # nn.Embedding default init: N(0, 1), then the padding row zeroed.
    w = jax.random.normal(key, (input_size, embedded_size), dtype=dtype)
    w = w.at[padding_idx].set(0.0)
    return w


if __name__ == "__main__":
    # Module config (synthetic, deterministic, small shapes).
    input_size = 32       # vocab size V
    embedded_size = 128   # embedding dim E (lane-aligned)
    padding_idx = 0
    B, S = 2, 8

    key = jax.random.PRNGKey(0)
    k_tab, k_idx = jax.random.split(key)

    table = make_embedding_table(k_tab, input_size, embedded_size, padding_idx)
    x = jax.random.randint(k_idx, (B, S), minval=0, maxval=input_size,
                           dtype=jnp.int32)
    x = x.at[0, 0].set(padding_idx)   # make sure padding_idx actually appears

    ref = jnp.take(table, x.reshape(-1), axis=0).reshape(B, S, embedded_size)

    # Path 1: small-vocab one-hot / MXU path (auto-selected at V=32).
    out = jax.block_until_ready(embedding_forward(x, table))
    assert out.shape == (B, S, embedded_size)
    assert jnp.allclose(out, ref, rtol=1e-6, atol=1e-6), "onehot path mismatch"
    assert jnp.all(out[0, 0] == 0.0), "padding_idx row should be zero"

    # Path 2: HBM-table DMA-gather path (forced, same small shapes).
    out_g = jax.block_until_ready(embedding_forward(x, table, force_gather=True))
    assert jnp.array_equal(out_g, ref), "gather path mismatch"
    assert jnp.all(out_g[0, 0] == 0.0), "padding_idx row should be zero (gather)"

    print("KERNEL_OK")
</pallas_src>

<mosaic_0001>
module attributes {stable_mosaic.version = 11 : i64} {
  func.func @_onehot_kernel(%arg0: i32, %arg1: memref<16x1xi32, #tpu.memory_space<vmem>>, %arg2: memref<32x128xf32, #tpu.memory_space<vmem>>, %arg3: memref<16x128xf32, #tpu.memory_space<vmem>>) attributes {dimension_semantics = [#tpu.dimension_semantics<parallel>], iteration_bounds = array<i64: 1>, scalar_prefetch = 0 : i64, scratch_operands = 0 : i64, tpu.core_type = #tpu.core_type<tc>, window_params = [{transform_indices = @transform_0, window_bounds = array<i64: 16, 1>}, {pipeline_mode = #tpu.pipeline_mode<synchronous>, transform_indices = @transform_1, window_bounds = array<i64: 32, 128>}, {transform_indices = @transform_2, window_bounds = array<i64: 16, 128>}]} {
    %c0 = arith.constant 0 : index
    %c0_0 = arith.constant 0 : index
    %0 = vector.load %arg1[%c0, %c0_0] : memref<16x1xi32, #tpu.memory_space<vmem>>, vector<16x1xi32>
    %1 = tpu.iota {dimensions = array<i32: 1>} : vector<16x32xi32>
    %2 = vector.broadcast %0 : vector<16x1xi32> to vector<16x32xi32>
    %3 = arith.cmpi eq, %1, %2 : vector<16x32xi32>
    %4 = arith.extui %3 : vector<16x32xi1> to vector<16x32xi32>
    %5 = arith.sitofp %4 : vector<16x32xi32> to vector<16x32xf32>
    %c0_1 = arith.constant 0 : index
    %c0_2 = arith.constant 0 : index
    %6 = vector.load %arg2[%c0_1, %c0_2] : memref<32x128xf32, #tpu.memory_space<vmem>>, vector<32x128xf32>
    %cst = arith.constant dense<0.000000e+00> : vector<16x128xf32>
    %7 = tpu.matmul %5, %6, %cst {dimension_numbers = #tpu.dot_dimension_numbers<[1], [0], [0], [1], [0, 0, 1, 1], [], []>, precision = #tpu.contract_precision<fp32>} : vector<16x32xf32>, vector<32x128xf32>, vector<16x128xf32> -> vector<16x128xf32>
    %c0_3 = arith.constant 0 : index
    %c0_4 = arith.constant 0 : index
    %8 = vector.load %arg3[%c0_3, %c0_4] : memref<16x128xf32, #tpu.memory_space<vmem>>, vector<16x128xf32>
    tpu.vector_store %arg3[%c0_3, %c0_4], %7 {strides = array<i32>} : memref<16x128xf32, #tpu.memory_space<vmem>>, vector<16x128xf32>,
    return
  }
  func.func @transform_0(%arg0: i32) -> (i32, i32) {
    %c0_i32 = arith.constant 0 : i32
    %c0_i32_0 = arith.constant 0 : i32
    return %arg0, %c0_i32 : i32, i32
  }
  func.func @transform_1(%arg0: i32) -> (i32, i32) {
    %c0_i32 = arith.constant 0 : i32
    %c0_i32_0 = arith.constant 0 : i32
    %c0_i32_1 = arith.constant 0 : i32
    return %c0_i32, %c0_i32_0 : i32, i32
  }
  func.func @transform_2(%arg0: i32) -> (i32, i32) {
    %c0_i32 = arith.constant 0 : i32
    %c0_i32_0 = arith.constant 0 : i32
    return %arg0, %c0_i32 : i32, i32
  }
}

</mosaic_0001>

<bundles_post_ra>
// kernel: tpu_custom_call.1
= control target key start
LH: loop header
LB: loop body
LE: loop exit
PB: predicated region body
PF: predicated region fallthrough
CT: control target
= control target key end

     0   :  { %7 = vsyncpa [#allocation3], 0  ;;  %s888_s0 = inlined_call_operand.vmem [shape: s32[16,1], index: 0, kind: input, shape index: {}]   ;;  %s889_s1 = inlined_call_operand.hbm [shape: f32[32,128], index: 1, kind: input, shape index: {}]   ;;  %s890_s2 = inlined_call_operand.hbm [shape: f32[16,128], index: 2, kind: output, shape index: {}]  }
   0x1   :  { %8 = vsyncpa [#allocation4], 0  ;;  %s761_s9 = smov [#allocation2]  }
   0x2   :  { %s16_s10 = sshll.u32 %s761_s9, 4  ;;  %s17_s10 = int_to_ptr.vmem [resolvable:$true] %s16_s10 }
   0x3   :  { %s725_s11 = scalar_lea.vmem %s17_s10, 512  ;;  %p730_p1 = scmp.lt.s32.totalorder %s17_s10, %s17_s10 }
   0x4   :  { %p726_p0 = scmp.ne.s32.totalorder %s17_s10, %s725_s11  ;;  %p731_p2 = scmp.lt.s32.totalorder %s725_s11, %s725_s11 }
   0x6   :  { %p732_p3 = por %p731_p2, %p730_p1 }
   0x8   :  { %p733_p4 = pnand %p732_p3, %p726_p0 }
   0xa   :  { %736 = shalt.err (!%p733_p4)
}
   0xb   :  { %s762_s12 = smov 128   ;;  %s763_s13 = smov 8  }
   0xc   :  { %22 = dma.hbm_to_vmem [thread:$0]  %s889_s1, 512, %s17_s10, [#allocation3], %s762_s12, %s762_s12, %s763_s13  }
   0xd   :  { %757 = dma.done.wait [#allocation3], 512  }
   0xe   :  { %758 = vsyncadd [#allocation3], 4294966784  ;;  %v764_v0 = vmov 0   ;;  %v26_v1 = vld [vmem:[%s888_s0] sm:$0xff]  ;;  %v45_v2 = vld [vmem:[#allocation2 + $0x18] sm:$0xff]  ;;  %v28_v27 = vlaneseq  ;;  %vm46_vm0 = vcmask 261120  }
   0xf   :  { %716 = vset.pattern.permute.xlu0 %v764_v0  ;;  %v791_v3 = vand.u32 4294901760, %v45_v2  ;;  %v44_v4 = vld [vmem:[#allocation2 + $0x10] sm:$0xff]  ;;  %v43_v5 = vld [vmem:[#allocation2 + $0x8] sm:$0xff]  ;;  %v42_v6 = vld [vmem:[#allocation2] sm:$0xff]  ;;  %v765_v30 = vmov 0.0  }
  0x10   :  { %31 = vperm.xlu0 %716, %v26_v1   ;;  %v27_v7 = vld [vmem:[%s888_s0 + $0x8] sm:$0xff]  ;;  %v796_v8 = vand.u32 4294901760, %v44_v4  ;;  %v798_v9 = vand.u32 4294901760, %v43_v5  ;;  %v800_v10 = vand.u32 4294901760, %v42_v6  ;;  %v29_v28 = vand.u32 127, %v28_v27  ;;  %s766_s0 = smov [#allocation5]  }
  0x11   :  { %v803_v11 = vsub.f32 %v45_v2, %v791_v3  ;;  %644 = vmatprep.subr.mxu0 %v791_v3  ;;  %s588_s1 = sshll.u32 %s766_s0, 4  ;;  %s589_s1 = int_to_ptr.vmem [resolvable:$true] %s588_s1 }
  0x12   :  { %v807_v12 = vsub.f32 %v44_v4, %v796_v8  ;;  %v810_v13 = vsub.f32 %v43_v5, %v798_v9  ;;  %v813_v14 = vsub.f32 %v42_v6, %v800_v10  ;;  %645 = vmatpush3.msra.mxu0 %v791_v3  ;;  %s737_s20 = scalar_lea.vmem %s589_s1, 256  ;;  %p742_p6 = scmp.lt.s32.totalorder %s589_s1, %s589_s1 }
  0x13   :  { %v817_v15 = vand.u32 4294901760, %v803_v11  ;;  %646 = vmatprep.subr.mxu0 %v796_v8  ;;  %p738_p5 = scmp.ne.s32.totalorder %s589_s1, %s737_s20  ;;  %p743_p7 = scmp.lt.s32.totalorder %s737_s20, %s737_s20 }
  0x14   :  { %34 = vperm.xlu0 %716, %v27_v7   ;;  %v821_v16 = vand.u32 4294901760, %v807_v12  ;;  %v824_v17 = vand.u32 4294901760, %v810_v13  ;;  %v827_v18 = vand.u32 4294901760, %v813_v14  ;;  %647 = vmatpush3.msra.mxu0 %v796_v8 }
  0x15   :  { %v170_v19 = vsub.f32 %v803_v11, %v817_v15  ;;  %648 = vmatprep.subr.mxu0 %v798_v9  ;;  %p744_p8 = por %p743_p7, %p742_p6 }
  0x16   :  { %v177_v20 = vsub.f32 %v807_v12, %v821_v16  ;;  %v184_v21 = vsub.f32 %v810_v13, %v824_v17  ;;  %649 = vmatpush3.msra.mxu0 %v798_v9  ;;  %v191_v23 = vsub.f32 %v813_v14, %v827_v18 }
  0x17   :  { %v171_v22 = vand.u32 4294901760, %v170_v19  ;;  %650 = vmatprep.subr.mxu0 %v800_v10  ;;  %p745_p9 = pnand %p744_p8, %p738_p5 }
  0x18   :  { %v178_v24 = vand.u32 4294901760, %v177_v20  ;;  %651 = vmatpush3.msra.mxu0 %v800_v10  ;;  %v185_v25 = vand.u32 4294901760, %v184_v21  ;;  %v192_v26 = vand.u32 4294901760, %v191_v23 }
  0x19   :  { %655 = vmatprep.subr.mxu1 %v171_v22  ;;  %666 = vmatprep.subr.mxu0 %v803_v11 }
  0x1a   :  { %656 = vmatpush3.msra.mxu1 %v171_v22 }
  0x1b   :  { %657 = vmatprep.subr.mxu1 %v178_v24 }
  0x1c   :  { %658 = vmatpush3.msra.mxu1 %v178_v24 }
  0x1d   :  { %659 = vmatprep.subr.mxu1 %v185_v25 }
  0x1e   :  { %660 = vmatpush3.msra.mxu1 %v185_v25 }
  0x1f   :  { %661 = vmatprep.subr.mxu1 %v192_v26 }
  0x20   :  { %662 = vmatpush3.msra.mxu1 %v192_v26 }
  0x21   :  { %677 = vmatprep.subr.mxu1 %v791_v3 }
  0x8b   :  { %v32_v29 = vpop.permute.xlu0 %31 }
  0x8c   :  { %vm36_vm1 = vcmp.eq.s32.totalorder %v29_v28, %v32_v29 }
  0x8d   :  { %v600_v31 = vsel %vm36_vm1, 1.0, %v765_v30 }
  0x8e   :  { %v48_v32 = vsel %vm46_vm0, %v600_v31, 0  ;;  %663 = vmatprep.mubr.msk.f32.mxu1 %vm46_vm0, %v600_v31 }
  0x8f   :  { %v123_v33 = vsub.f32 %v48_v32, %v48_v32  ;;  %v35_v34 = vpop.permute.xlu0 %34 }
  0x90   :  { %vm37_vm2 = vcmp.eq.s32.totalorder %v29_v28, %v35_v34 }
  0x91   :  { %v601_v35 = vsel %vm37_vm2, 1.0, %v765_v30  ;;  %v124_v36 = vand.u32 4294901760, %v123_v33 }
  0x92   :  { %v51_v37 = vsel %vm46_vm0, %v601_v35, 0  ;;  %664 = vmatmul.mubr.msk.f32.vlgmr.msra.gmra.mxu1 %vm46_vm0, %v601_v35 }
  0x93   :  { %v133_v38 = vsub.f32 %v51_v37, %v51_v37  ;;  %678 = vmatpush3.msra.mxu1 %v791_v3  ;;  %685 = vmatprep.mubr.f32.mxu1 %v124_v36  ;;  %v125_v39 = vsub.f32 %v123_v33, %v124_v36 }
  0x94   :  { %679 = vmatprep.subr.mxu1 %v796_v8 }
  0x95   :  { %680 = vmatpush3.msra.mxu1 %v796_v8  ;;  %v126_v40 = vand.u32 4294901760, %v125_v39  ;;  %v134_v41 = vand.u32 4294901760, %v133_v38 }
  0x96   :  { %681 = vmatprep.subr.mxu1 %v798_v9 }
  0x97   :  { %682 = vmatpush3.msra.mxu1 %v798_v9  ;;  %652 = vmatprep.mubr.f32.mxu0 %v126_v40  ;;  %v135_v42 = vsub.f32 %v133_v38, %v134_v41 }
  0x98   :  { %683 = vmatprep.subr.mxu1 %v800_v10 }
  0x99   :  { %684 = vmatpush3.msra.mxu1 %v800_v10  ;;  %v136_v43 = vand.u32 4294901760, %v135_v42 }
  0x9a   :  { %686 = vmatmul.mubr.f32.vlgmr.msra.gmra.mxu1 %v134_v41  ;;  %699 = vmatprep.subr.mxu1 %v791_v3 }
  0x9b   :  { %700 = vmatpush3.msra.mxu1 %v791_v3  ;;  %707 = vmatprep.mubr.msk.f32.mxu1 %vm46_vm0, %v600_v31 }
  0x9c   :  { %653 = vmatmul.mubr.f32.vlgmr.msra.gmra.mxu0 %v136_v43  ;;  %701 = vmatprep.subr.mxu1 %v796_v8 }
  0x9d   :  { %667 = vmatpush3.msra.mxu0 %v803_v11  ;;  %674 = vmatprep.mubr.f32.mxu0 %v123_v33 }
  0x9e   :  { %668 = vmatprep.subr.mxu0 %v807_v12  ;;  %702 = vmatpush3.msra.mxu1 %v796_v8 }
  0x9f   :  { %669 = vmatpush3.msra.mxu0 %v807_v12  ;;  %703 = vmatprep.subr.mxu1 %v798_v9 }
  0xa0   :  { %670 = vmatprep.subr.mxu0 %v810_v13  ;;  %704 = vmatpush3.msra.mxu1 %v798_v9 }
  0xa1   :  { %671 = vmatpush3.msra.mxu0 %v810_v13  ;;  %705 = vmatprep.subr.mxu1 %v800_v10 }
  0xa2   :  { %672 = vmatprep.subr.mxu0 %v813_v14  ;;  %706 = vmatpush3.msra.mxu1 %v800_v10 }
  0xa3   :  { %673 = vmatpush3.msra.mxu0 %v813_v14  ;;  %708 = vmatmul.mubr.msk.f32.vlgmr.msra.gmra.mxu1 %vm46_vm0, %v601_v35 }
  0xa4   :  { %675 = vmatmul.mubr.f32.vlgmr.msra.gmra.mxu0 %v133_v38  ;;  %688 = vmatprep.subr.mxu0 %v817_v15 }
  0xa5   :  { %689 = vmatpush3.msra.mxu0 %v817_v15  ;;  %696 = vmatprep.mubr.msk.f32.mxu0 %vm46_vm0, %v600_v31 }
  0xa6   :  { %690 = vmatprep.subr.mxu0 %v821_v16 }
  0xa7   :  { %691 = vmatpush3.msra.mxu0 %v821_v16 }
  0xa8   :  { %692 = vmatprep.subr.mxu0 %v824_v17 }
  0xa9   :  { %693 = vmatpush3.msra.mxu0 %v824_v17 }
  0xaa   :  { %694 = vmatprep.subr.mxu0 %v827_v18 }
  0xab   :  { %695 = vmatpush3.msra.mxu0 %v827_v18 }
  0xac   :  { %697 = vmatmul.mubr.msk.f32.vlgmr.msra.gmra.mxu0 %vm46_vm0, %v601_v35 }
 0x152   :  { %v665_v45 = vpop.f32.mrf.mxu1 }
 0x154   :  { %v229_v47 = vpop.f32.mrf.mxu1 }
 0x15a   :  { %v687_v50 = vpop.f32.mrf.mxu1 }
 0x15c   :  { %v654_v44 = vpop.f32.mrf.mxu0  ;;  %v399_v55 = vpop.f32.mrf.mxu1 }
 0x15d   :  { %v236_v49 = vadd.f32 %v665_v45, %v654_v44 }
 0x15e   :  { %v128_v46 = vpop.f32.mrf.mxu0 }
 0x15f   :  { %v230_v52 = vadd.f32 %v229_v47, %v128_v46 }
 0x163   :  { %v709_v57 = vpop.f32.mrf.mxu1 }
 0x164   :  { %v676_v48 = vpop.f32.mrf.mxu0 }
 0x165   :  { %v323_v53 = vadd.f32 %v676_v48, %v236_v49  ;;  %v571_v0 = vpop.f32.mrf.mxu1 }
 0x166   :  { %v315_v51 = vpop.f32.mrf.mxu0 }
 0x167   :  { %v316_v54 = vadd.f32 %v315_v51, %v230_v52  ;;  %v408_v56 = vadd.f32 %v687_v50, %v323_v53 }
 0x169   :  { %v400_v60 = vadd.f32 %v399_v55, %v316_v54 }
 0x16c   :  { %v698_v58 = vpop.f32.mrf.mxu0 }
 0x16d   :  { %v497_v59 = vadd.f32 %v698_v58, %v408_v56 }
 0x16e   :  { %v490_v61 = vpop.f32.mrf.mxu0 }
 0x16f   :  { %v578_v62 = vadd.f32 %v709_v57, %v497_v59  ;;  %v491_v63 = vadd.f32 %v490_v61, %v400_v60 }
 0x171   :  { %582 = vst [vmem:[#allocation5 + $0x8] sm:$0xff] %v578_v62  ;;  %v572_v1 = vadd.f32 %v571_v0, %v491_v63 }
 0x173   :  { %581 = vst [vmem:[#allocation5] sm:$0xff] %v572_v1 }
 0x174   :  { %748 = shalt.err (!%p745_p9)
}
 0x175   :  { %594 = dma.vmem_to_hbm [thread:$0]  %s589_s1, 256, %s890_s2, [#allocation4], %s762_s12, %s762_s12, %s763_s13  }
 0x176   :  { %759 = dma.done.wait [#allocation4], 256  }
 0x177   :  { %760 = vsyncadd [#allocation4], 4294967040 }
 0x178   :  { %598 = vsyncpa [#allocation3], 1 }
 0x179   :  { %599 = vsyncpa [#allocation4], 1 }

</bundles_post_ra>
